<compile_context>
chip_gen: v7x
topology: tpu7x:2x2x1
jax: 0.10.0
libtpu: 0.0.40
codegen_flags: <defaults>
</compile_context>

<pallas_src>
import functools

import jax
import jax.numpy as jnp
from jax.experimental import pallas as pl
from jax.experimental.pallas import tpu as pltpu  # noqa: F401  (TPU backend assumed)

# Problem sizes (module defaults, small batch).
X_DIM = 2
Z_DIM = 2
N_LAYERS = 2          # fixed to 2 (module default); kernel unrolls them
NUM_HIDDEN = 64
BATCH = 8

# Padded / packed (TPU-friendly) sizes.
N_PAD = 8             # batch rows -> one sublane tile
LANES = 128           # every feature dim zero-padded to 128 lanes
KW = 64               # every weight block stored as (64, 128): K padded to 64
N_BLOCKS = 9          # enc: w0,w1,w2,w_mu,w_lv ; dec: w0,w1,w2,w3
W_ROWS = N_BLOCKS * KW        # 576
B_ROWS = N_BLOCKS * N_PAD     # 72
OUT_ROWS = 4 * N_PAD          # 32  (mu | logvar | z | y stacked on sublanes)


def _vae_kernel(xe_ref, w_ref, b_ref, out_ref):
    """xe_ref: (16,128) f32  rows 0:8 = x (lanes 0:2), rows 8:16 = eps (lanes 0:2)
       w_ref : (576,128) bf16  nine 64x128 (in,out) weight blocks
       b_ref : (72,128)  f32   nine biases, each replicated over 8 sublanes
       out_ref: (32,128) f32   rows 0:8 mu | 8:16 logvar | 16:24 z | 24:32 y"""
    f32 = jnp.float32

    x = xe_ref[0:N_PAD, :]            # (8, 128), x in lanes 0:2, zeros elsewhere
    eps = xe_ref[N_PAD:2 * N_PAD, :]  # (8, 128), eps in lanes 0:2, zeros elsewhere

    def layer(h, i, relu):
        # Static slab slices (zero runtime cost); all offsets tile-aligned.
        w = w_ref[KW * i:KW * (i + 1), :].astype(f32)      # (64, 128)
        b = b_ref[N_PAD * i:N_PAD * (i + 1), :]            # (8, 128)
        o = jnp.dot(h[:, :KW], w, preferred_element_type=f32) + b
        return jnp.maximum(o, 0.0) if relu else o

    # ---- Encoder MLP ----
    h = layer(x, 0, True)
    h = layer(h, 1, True)
    h = layer(h, 2, True)
    mu = layer(h, 3, False)       # values in lanes 0:2, exact zeros elsewhere
    logvar = layer(h, 4, False)   # values in lanes 0:2, exact zeros elsewhere

    # ---- Reparameterization: z = mu + eps * exp(0.5*logvar) ----
    # Padded lanes: mu = 0, eps = 0, exp(0) = 1  ->  z = 0 there (stays clean).
    z = mu + eps * jnp.exp(0.5 * logvar)

    # ---- Decoder MLP ----
    g = layer(z, 5, True)
    g = layer(g, 6, True)
    g = layer(g, 7, True)
    y = layer(g, 8, False)        # values in lanes 0:2

    # ---- Single packed output slab ----
    out_ref[0:N_PAD, :] = mu
    out_ref[N_PAD:2 * N_PAD, :] = logvar
    out_ref[2 * N_PAD:3 * N_PAD, :] = z
    out_ref[3 * N_PAD:4 * N_PAD, :] = y


def pack_params(params):
    """Pad + pack parameters ONCE (call outside the jitted forward)."""
    enc, dec = params["enc"], params["dec"]

    def wblk(w):  # (k_in, n_out) f32 -> (64, 128) bf16 zero-padded block
        k, m = w.shape
        blk = jnp.zeros((KW, LANES), jnp.float32).at[:k, :m].set(w)
        return blk.astype(jnp.bfloat16)

    def bblk(b):  # (n_out,) f32 -> (8, 128) f32 row-replicated block
        row = jnp.zeros((LANES,), jnp.float32).at[:b.shape[0]].set(b)
        return jnp.tile(row[None, :], (N_PAD, 1))

    w_order = [enc["w0"], enc["w1"], enc["w2"], enc["w_mu"], enc["w_lv"],
               dec["w0"], dec["w1"], dec["w2"], dec["w3"]]
    b_order = [enc["b0"], enc["b1"], enc["b2"], enc["b_mu"], enc["b_lv"],
               dec["b0"], dec["b1"], dec["b2"], dec["b3"]]
    w_slab = jnp.concatenate([wblk(w) for w in w_order], axis=0)  # (576,128) bf16
    b_slab = jnp.concatenate([bblk(b) for b in b_order], axis=0)  # (72,128) f32
    return w_slab, b_slab


@functools.partial(jax.jit, static_argnames=("deterministic",))
def soft_intro_vae_forward(x, eps, w_slab, b_slab, deterministic=False):
    """x: (n, X_DIM) f32, eps: (n, Z_DIM) f32, n <= 8.
    Returns (mu, logvar, z, y) matching SoftIntroVAESimple.forward."""
    n = x.shape[0]
    assert n <= N_PAD

    x_p = jnp.zeros((N_PAD, LANES), jnp.float32).at[:n, :X_DIM].set(
        x.astype(jnp.float32))
    if deterministic:
        # z = mu + 0 * std == mu, and y = decode(mu): exact deterministic path.
        e_p = jnp.zeros((N_PAD, LANES), jnp.float32)
    else:
        e_p = jnp.zeros((N_PAD, LANES), jnp.float32).at[:n, :Z_DIM].set(
            eps.astype(jnp.float32))
    xe = jnp.concatenate([x_p, e_p], axis=0)  # (16, 128)

    out = pl.pallas_call(
        _vae_kernel,
        out_shape=jax.ShapeDtypeStruct((OUT_ROWS, LANES), jnp.float32),
        grid_spec=pl.GridSpec(
            grid=(),
            in_specs=[
                pl.BlockSpec((2 * N_PAD, LANES), lambda: (0, 0)),
                pl.BlockSpec((W_ROWS, LANES), lambda: (0, 0)),
                pl.BlockSpec((B_ROWS, LANES), lambda: (0, 0)),
            ],
            out_specs=pl.BlockSpec((OUT_ROWS, LANES), lambda: (0, 0)),
        ),
    )(xe, w_slab, b_slab)

    mu = out[0:n, :Z_DIM]
    logvar = out[N_PAD:N_PAD + n, :Z_DIM]
    z = out[2 * N_PAD:2 * N_PAD + n, :Z_DIM]
    y = out[3 * N_PAD:3 * N_PAD + n, :X_DIM]
    return mu, logvar, z, y


def init_params(key):
    """Deterministic parameter init with shapes implied by the module.
    (encoder output Linear(hidden, 2*zdim) is stored split as w_mu / w_lv,
    matching the mu/logvar chunk; decoder.loggamma is unused in forward.)"""
    ks = jax.random.split(key, 20)
    scale = 0.1

    def w(k, shape):
        return (scale * jax.random.normal(k, shape)).astype(jnp.float32)

    enc = {
        "w0": w(ks[0], (X_DIM, NUM_HIDDEN)), "b0": w(ks[1], (NUM_HIDDEN,)),
        "w1": w(ks[2], (NUM_HIDDEN, NUM_HIDDEN)), "b1": w(ks[3], (NUM_HIDDEN,)),
        "w2": w(ks[4], (NUM_HIDDEN, NUM_HIDDEN)), "b2": w(ks[5], (NUM_HIDDEN,)),
        "w_mu": w(ks[6], (NUM_HIDDEN, Z_DIM)), "b_mu": w(ks[7], (Z_DIM,)),
        "w_lv": w(ks[8], (NUM_HIDDEN, Z_DIM)), "b_lv": w(ks[9], (Z_DIM,)),
    }
    dec = {
        "w0": w(ks[10], (Z_DIM, NUM_HIDDEN)), "b0": w(ks[11], (NUM_HIDDEN,)),
        "w1": w(ks[12], (NUM_HIDDEN, NUM_HIDDEN)), "b1": w(ks[13], (NUM_HIDDEN,)),
        "w2": w(ks[14], (NUM_HIDDEN, NUM_HIDDEN)), "b2": w(ks[15], (NUM_HIDDEN,)),
        "w3": w(ks[16], (NUM_HIDDEN, X_DIM)), "b3": w(ks[17], (X_DIM,)),
    }
    return {"enc": enc, "dec": dec}


def reference_forward(x, eps, params):
    """Pure-JAX reference matching the PyTorch forward semantics.
    Weights are rounded to bf16 (the kernel's storage dtype) so the comparison
    isolates kernel correctness rather than shared quantization."""
    def rw(w):
        return w.astype(jnp.bfloat16).astype(jnp.float32)

    enc, dec = params["enc"], params["dec"]
    h = jax.nn.relu(x @ rw(enc["w0"]) + enc["b0"])
    h = jax.nn.relu(h @ rw(enc["w1"]) + enc["b1"])
    h = jax.nn.relu(h @ rw(enc["w2"]) + enc["b2"])
    mu = h @ rw(enc["w_mu"]) + enc["b_mu"]
    logvar = h @ rw(enc["w_lv"]) + enc["b_lv"]
    z = mu + eps * jnp.exp(0.5 * logvar)
    g = jax.nn.relu(z @ rw(dec["w0"]) + dec["b0"])
    g = jax.nn.relu(g @ rw(dec["w1"]) + dec["b1"])
    g = jax.nn.relu(g @ rw(dec["w2"]) + dec["b2"])
    y = g @ rw(dec["w3"]) + dec["b3"]
    return mu, logvar, z, y


if __name__ == "__main__":
    key = jax.random.PRNGKey(0)
    k_param, k_x, k_eps = jax.random.split(key, 3)

    params = init_params(k_param)
    w_slab, b_slab = pack_params(params)   # padded & packed ONCE, outside jit

    x = jax.random.normal(k_x, (BATCH, X_DIM), dtype=jnp.float32)
    eps = jax.random.normal(k_eps, (BATCH, Z_DIM), dtype=jnp.float32)

    # Stochastic path.
    mu, logvar, z, y = soft_intro_vae_forward(x, eps, w_slab, b_slab,
                                              deterministic=False)
    jax.block_until_ready((mu, logvar, z, y))

    mu_r, lv_r, z_r, y_r = reference_forward(x, eps, params)
    assert jnp.allclose(mu, mu_r, atol=1e-4), "mu mismatch"
    assert jnp.allclose(logvar, lv_r, atol=1e-4), "logvar mismatch"
    assert jnp.allclose(z, z_r, atol=1e-4), "z mismatch"
    assert jnp.allclose(y, y_r, atol=1e-4), "y mismatch"

    # Deterministic path: z == mu and y == decode(mu).
    mu_d, lv_d, z_d, y_d = soft_intro_vae_forward(x, eps, w_slab, b_slab,
                                                  deterministic=True)
    jax.block_until_ready((mu_d, lv_d, z_d, y_d))
    _, _, _, y_r0 = reference_forward(x, jnp.zeros_like(eps), params)
    assert jnp.allclose(z_d, mu_d, atol=1e-6), "deterministic z != mu"
    assert jnp.allclose(y_d, y_r0, atol=1e-4), "deterministic y mismatch"

    print("KERNEL_OK")
</pallas_src>

<mosaic_0001>
module attributes {stable_mosaic.version = 11 : i64} {
  func.func @_vae_kernel(%arg0: memref<16x128xf32, #tpu.memory_space<vmem>>, %arg1: memref<576x128xbf16, #tpu.memory_space<vmem>>, %arg2: memref<72x128xf32, #tpu.memory_space<vmem>>, %arg3: memref<32x128xf32, #tpu.memory_space<vmem>>) attributes {dimension_semantics = [], scalar_prefetch = 0 : i64, scratch_operands = 0 : i64, tpu.core_type = #tpu.core_type<tc>} {
    %c0 = arith.constant 0 : index
    %c0_0 = arith.constant 0 : index
    %0 = vector.load %arg0[%c0, %c0_0] : memref<16x128xf32, #tpu.memory_space<vmem>>, vector<8x128xf32>
    %c8 = arith.constant 8 : index
    %c0_1 = arith.constant 0 : index
    %1 = vector.load %arg0[%c8, %c0_1] : memref<16x128xf32, #tpu.memory_space<vmem>>, vector<8x128xf32>
    %c0_2 = arith.constant 0 : index
    %c0_3 = arith.constant 0 : index
    %2 = vector.load %arg1[%c0_2, %c0_3] : memref<576x128xbf16, #tpu.memory_space<vmem>>, vector<64x128xbf16>
    %3 = arith.extf %2 : vector<64x128xbf16> to vector<64x128xf32>
    %c0_4 = arith.constant 0 : index
    %c0_5 = arith.constant 0 : index
    %4 = vector.load %arg2[%c0_4, %c0_5] : memref<72x128xf32, #tpu.memory_space<vmem>>, vector<8x128xf32>
    %5 = vector.extract_strided_slice %0 {offsets = [0, 0], sizes = [8, 64], strides = [1, 1]} : vector<8x128xf32> to vector<8x64xf32>
    %cst = arith.constant dense<0.000000e+00> : vector<8x128xf32>
    %6 = tpu.matmul %5, %3, %cst {dimension_numbers = #tpu.dot_dimension_numbers<[1], [0], [0], [1], [0, 0, 1, 1], [], []>} : vector<8x64xf32>, vector<64x128xf32>, vector<8x128xf32> -> vector<8x128xf32>
    %7 = arith.addf %6, %4 : vector<8x128xf32>
    %cst_6 = arith.constant 0.000000e+00 : f32
    %8 = vector.broadcast %cst_6 : f32 to vector<8x128xf32>
    %9 = arith.maximumf %7, %8 : vector<8x128xf32>
    %c64 = arith.constant 64 : index
    %c0_7 = arith.constant 0 : index
    %10 = vector.load %arg1[%c64, %c0_7] : memref<576x128xbf16, #tpu.memory_space<vmem>>, vector<64x128xbf16>
    %11 = arith.extf %10 : vector<64x128xbf16> to vector<64x128xf32>
    %c8_8 = arith.constant 8 : index
    %c0_9 = arith.constant 0 : index
    %12 = vector.load %arg2[%c8_8, %c0_9] : memref<72x128xf32, #tpu.memory_space<vmem>>, vector<8x128xf32>
    %13 = vector.extract_strided_slice %9 {offsets = [0, 0], sizes = [8, 64], strides = [1, 1]} : vector<8x128xf32> to vector<8x64xf32>
    %cst_10 = arith.constant dense<0.000000e+00> : vector<8x128xf32>
    %14 = tpu.matmul %13, %11, %cst_10 {dimension_numbers = #tpu.dot_dimension_numbers<[1], [0], [0], [1], [0, 0, 1, 1], [], []>} : vector<8x64xf32>, vector<64x128xf32>, vector<8x128xf32> -> vector<8x128xf32>
    %15 = arith.addf %14, %12 : vector<8x128xf32>
    %cst_11 = arith.constant 0.000000e+00 : f32
    %16 = vector.broadcast %cst_11 : f32 to vector<8x128xf32>
    %17 = arith.maximumf %15, %16 : vector<8x128xf32>
    %c128 = arith.constant 128 : index
    %c0_12 = arith.constant 0 : index
    %18 = vector.load %arg1[%c128, %c0_12] : memref<576x128xbf16, #tpu.memory_space<vmem>>, vector<64x128xbf16>
    %19 = arith.extf %18 : vector<64x128xbf16> to vector<64x128xf32>
    %c16 = arith.constant 16 : index
    %c0_13 = arith.constant 0 : index
    %20 = vector.load %arg2[%c16, %c0_13] : memref<72x128xf32, #tpu.memory_space<vmem>>, vector<8x128xf32>
    %21 = vector.extract_strided_slice %17 {offsets = [0, 0], sizes = [8, 64], strides = [1, 1]} : vector<8x128xf32> to vector<8x64xf32>
    %cst_14 = arith.constant dense<0.000000e+00> : vector<8x128xf32>
    %22 = tpu.matmul %21, %19, %cst_14 {dimension_numbers = #tpu.dot_dimension_numbers<[1], [0], [0], [1], [0, 0, 1, 1], [], []>} : vector<8x64xf32>, vector<64x128xf32>, vector<8x128xf32> -> vector<8x128xf32>
    %23 = arith.addf %22, %20 : vector<8x128xf32>
    %cst_15 = arith.constant 0.000000e+00 : f32
    %24 = vector.broadcast %cst_15 : f32 to vector<8x128xf32>
    %25 = arith.maximumf %23, %24 : vector<8x128xf32>
    %c192 = arith.constant 192 : index
    %c0_16 = arith.constant 0 : index
    %26 = vector.load %arg1[%c192, %c0_16] : memref<576x128xbf16, #tpu.memory_space<vmem>>, vector<64x128xbf16>
    %27 = arith.extf %26 : vector<64x128xbf16> to vector<64x128xf32>
    %c24 = arith.constant 24 : index
    %c0_17 = arith.constant 0 : index
    %28 = vector.load %arg2[%c24, %c0_17] : memref<72x128xf32, #tpu.memory_space<vmem>>, vector<8x128xf32>
    %29 = vector.extract_strided_slice %25 {offsets = [0, 0], sizes = [8, 64], strides = [1, 1]} : vector<8x128xf32> to vector<8x64xf32>
    %cst_18 = arith.constant dense<0.000000e+00> : vector<8x128xf32>
    %30 = tpu.matmul %29, %27, %cst_18 {dimension_numbers = #tpu.dot_dimension_numbers<[1], [0], [0], [1], [0, 0, 1, 1], [], []>} : vector<8x64xf32>, vector<64x128xf32>, vector<8x128xf32> -> vector<8x128xf32>
    %31 = arith.addf %30, %28 : vector<8x128xf32>
    %c256 = arith.constant 256 : index
    %c0_19 = arith.constant 0 : index
    %32 = vector.load %arg1[%c256, %c0_19] : memref<576x128xbf16, #tpu.memory_space<vmem>>, vector<64x128xbf16>
    %33 = arith.extf %32 : vector<64x128xbf16> to vector<64x128xf32>
    %c32 = arith.constant 32 : index
    %c0_20 = arith.constant 0 : index
    %34 = vector.load %arg2[%c32, %c0_20] : memref<72x128xf32, #tpu.memory_space<vmem>>, vector<8x128xf32>
    %35 = vector.extract_strided_slice %25 {offsets = [0, 0], sizes = [8, 64], strides = [1, 1]} : vector<8x128xf32> to vector<8x64xf32>
    %cst_21 = arith.constant dense<0.000000e+00> : vector<8x128xf32>
    %36 = tpu.matmul %35, %33, %cst_21 {dimension_numbers = #tpu.dot_dimension_numbers<[1], [0], [0], [1], [0, 0, 1, 1], [], []>} : vector<8x64xf32>, vector<64x128xf32>, vector<8x128xf32> -> vector<8x128xf32>
    %37 = arith.addf %36, %34 : vector<8x128xf32>
    %cst_22 = arith.constant 5.000000e-01 : f32
    %38 = vector.broadcast %cst_22 : f32 to vector<8x128xf32>
    %39 = arith.mulf %38, %37 : vector<8x128xf32>
    %40 = math.exp %39 : vector<8x128xf32>
    %41 = arith.mulf %1, %40 : vector<8x128xf32>
    %42 = arith.addf %31, %41 : vector<8x128xf32>
    %c320 = arith.constant 320 : index
    %c0_23 = arith.constant 0 : index
    %43 = vector.load %arg1[%c320, %c0_23] : memref<576x128xbf16, #tpu.memory_space<vmem>>, vector<64x128xbf16>
    %44 = arith.extf %43 : vector<64x128xbf16> to vector<64x128xf32>
    %c40 = arith.constant 40 : index
    %c0_24 = arith.constant 0 : index
    %45 = vector.load %arg2[%c40, %c0_24] : memref<72x128xf32, #tpu.memory_space<vmem>>, vector<8x128xf32>
    %46 = vector.extract_strided_slice %42 {offsets = [0, 0], sizes = [8, 64], strides = [1, 1]} : vector<8x128xf32> to vector<8x64xf32>
    %cst_25 = arith.constant dense<0.000000e+00> : vector<8x128xf32>
    %47 = tpu.matmul %46, %44, %cst_25 {dimension_numbers = #tpu.dot_dimension_numbers<[1], [0], [0], [1], [0, 0, 1, 1], [], []>} : vector<8x64xf32>, vector<64x128xf32>, vector<8x128xf32> -> vector<8x128xf32>
    %48 = arith.addf %47, %45 : vector<8x128xf32>
    %cst_26 = arith.constant 0.000000e+00 : f32
    %49 = vector.broadcast %cst_26 : f32 to vector<8x128xf32>
    %50 = arith.maximumf %48, %49 : vector<8x128xf32>
    %c384 = arith.constant 384 : index
    %c0_27 = arith.constant 0 : index
    %51 = vector.load %arg1[%c384, %c0_27] : memref<576x128xbf16, #tpu.memory_space<vmem>>, vector<64x128xbf16>
    %52 = arith.extf %51 : vector<64x128xbf16> to vector<64x128xf32>
    %c48 = arith.constant 48 : index
    %c0_28 = arith.constant 0 : index
    %53 = vector.load %arg2[%c48, %c0_28] : memref<72x128xf32, #tpu.memory_space<vmem>>, vector<8x128xf32>
    %54 = vector.extract_strided_slice %50 {offsets = [0, 0], sizes = [8, 64], strides = [1, 1]} : vector<8x128xf32> to vector<8x64xf32>
    %cst_29 = arith.constant dense<0.000000e+00> : vector<8x128xf32>
    %55 = tpu.matmul %54, %52, %cst_29 {dimension_numbers = #tpu.dot_dimension_numbers<[1], [0], [0], [1], [0, 0, 1, 1], [], []>} : vector<8x64xf32>, vector<64x128xf32>, vector<8x128xf32> -> vector<8x128xf32>
    %56 = arith.addf %55, %53 : vector<8x128xf32>
    %cst_30 = arith.constant 0.000000e+00 : f32
    %57 = vector.broadcast %cst_30 : f32 to vector<8x128xf32>
    %58 = arith.maximumf %56, %57 : vector<8x128xf32>
    %c448 = arith.constant 448 : index
    %c0_31 = arith.constant 0 : index
    %59 = vector.load %arg1[%c448, %c0_31] : memref<576x128xbf16, #tpu.memory_space<vmem>>, vector<64x128xbf16>
    %60 = arith.extf %59 : vector<64x128xbf16> to vector<64x128xf32>
    %c56 = arith.constant 56 : index
    %c0_32 = arith.constant 0 : index
    %61 = vector.load %arg2[%c56, %c0_32] : memref<72x128xf32, #tpu.memory_space<vmem>>, vector<8x128xf32>
    %62 = vector.extract_strided_slice %58 {offsets = [0, 0], sizes = [8, 64], strides = [1, 1]} : vector<8x128xf32> to vector<8x64xf32>
    %cst_33 = arith.constant dense<0.000000e+00> : vector<8x128xf32>
    %63 = tpu.matmul %62, %60, %cst_33 {dimension_numbers = #tpu.dot_dimension_numbers<[1], [0], [0], [1], [0, 0, 1, 1], [], []>} : vector<8x64xf32>, vector<64x128xf32>, vector<8x128xf32> -> vector<8x128xf32>
    %64 = arith.addf %63, %61 : vector<8x128xf32>
    %cst_34 = arith.constant 0.000000e+00 : f32
    %65 = vector.broadcast %cst_34 : f32 to vector<8x128xf32>
    %66 = arith.maximumf %64, %65 : vector<8x128xf32>
    %c512 = arith.constant 512 : index
    %c0_35 = arith.constant 0 : index
    %67 = vector.load %arg1[%c512, %c0_35] : memref<576x128xbf16, #tpu.memory_space<vmem>>, vector<64x128xbf16>
    %68 = arith.extf %67 : vector<64x128xbf16> to vector<64x128xf32>
    %c64_36 = arith.constant 64 : index
    %c0_37 = arith.constant 0 : index
    %69 = vector.load %arg2[%c64_36, %c0_37] : memref<72x128xf32, #tpu.memory_space<vmem>>, vector<8x128xf32>
    %70 = vector.extract_strided_slice %66 {offsets = [0, 0], sizes = [8, 64], strides = [1, 1]} : vector<8x128xf32> to vector<8x64xf32>
    %cst_38 = arith.constant dense<0.000000e+00> : vector<8x128xf32>
    %71 = tpu.matmul %70, %68, %cst_38 {dimension_numbers = #tpu.dot_dimension_numbers<[1], [0], [0], [1], [0, 0, 1, 1], [], []>} : vector<8x64xf32>, vector<64x128xf32>, vector<8x128xf32> -> vector<8x128xf32>
    %72 = arith.addf %71, %69 : vector<8x128xf32>
    %c0_39 = arith.constant 0 : index
    %c0_40 = arith.constant 0 : index
    %73 = vector.load %arg3[%c0_39, %c0_40] : memref<32x128xf32, #tpu.memory_space<vmem>>, vector<8x128xf32>
    tpu.vector_store %arg3[%c0_39, %c0_40], %31 {strides = array<i32>} : memref<32x128xf32, #tpu.memory_space<vmem>>, vector<8x128xf32>,
    %c8_41 = arith.constant 8 : index
    %c0_42 = arith.constant 0 : index
    %74 = vector.load %arg3[%c8_41, %c0_42] : memref<32x128xf32, #tpu.memory_space<vmem>>, vector<8x128xf32>
    tpu.vector_store %arg3[%c8_41, %c0_42], %37 {strides = array<i32>} : memref<32x128xf32, #tpu.memory_space<vmem>>, vector<8x128xf32>,
    %c16_43 = arith.constant 16 : index
    %c0_44 = arith.constant 0 : index
    %75 = vector.load %arg3[%c16_43, %c0_44] : memref<32x128xf32, #tpu.memory_space<vmem>>, vector<8x128xf32>
    tpu.vector_store %arg3[%c16_43, %c0_44], %42 {strides = array<i32>} : memref<32x128xf32, #tpu.memory_space<vmem>>, vector<8x128xf32>,
    %c24_45 = arith.constant 24 : index
    %c0_46 = arith.constant 0 : index
    %76 = vector.load %arg3[%c24_45, %c0_46] : memref<32x128xf32, #tpu.memory_space<vmem>>, vector<8x128xf32>
    tpu.vector_store %arg3[%c24_45, %c0_46], %72 {strides = array<i32>} : memref<32x128xf32, #tpu.memory_space<vmem>>, vector<8x128xf32>,
    return
  }
}

</mosaic_0001>

<bundles_post_ra>
// kernel: soft_intro_vae_forward.1
= control target key start
LH: loop header
LB: loop body
LE: loop exit
PB: predicated region body
PF: predicated region fallthrough
CT: control target
= control target key end

     0   :  { %8 = vsyncpa [#allocation3], 0  ;;  %s1438_s12 = smov [#allocation2]   ;;  %s1584_s0 = inlined_call_operand.vmem [shape: f32[16,128], index: 0, kind: input, shape index: {}]   ;;  %s1585_s1 = inlined_call_operand.hbm [shape: bf16[576,128], index: 1, kind: input, shape index: {}]   ;;  %s1586_s2 = inlined_call_operand.vmem [shape: f32[72,128], index: 2, kind: input, shape index: {}]   ;;  %s1587_s3 = inlined_call_operand.vmem [shape: f32[32,128], index: 3, kind: output, shape index: {}]  }
   0x1   :  { %s16_s13 = sshll.u32 %s1438_s12, 4  ;;  %s1414_s16 = scalar_lea.hbm %s1585_s1, 4608  ;;  %s17_s13 = int_to_ptr.vmem [resolvable:$true] %s16_s13 }
   0x2   :  { %p1415_p0 = scmp.ne.s32.totalorder %s1585_s1, %s1414_s16  ;;  %p1418_p1 = scmp.lt.u32.totalorder %s1414_s16, %s1585_s1 }
   0x4   :  { %p1420_p2 = pnand %p1418_p1, %p1415_p0 }
   0x6   :  { %1423 = shalt.err (!%p1420_p2)
}
   0x7   :  { %s1424_s21 = scalar_lea.vmem %s17_s13, 4608  ;;  %p1429_p4 = scmp.lt.s32.totalorder %s17_s13, %s17_s13 }
   0x8   :  { %p1425_p3 = scmp.ne.s32.totalorder %s17_s13, %s1424_s21  ;;  %p1430_p5 = scmp.lt.s32.totalorder %s1424_s21, %s1424_s21 }
   0xa   :  { %p1431_p6 = por %p1430_p5, %p1429_p4 }
   0xc   :  { %p1432_p7 = pnand %p1431_p6, %p1425_p3 }
   0xe   :  { %1435 = shalt.err (!%p1432_p7)
}
   0xf   :  { %s1439_s22 = smov 64   ;;  %s1440_s23 = smov 4  }
  0x10   :  { %22 = dma.hbm_to_vmem [thread:$0]  %s1585_s1, 4608, %s17_s13, [#allocation3], %s1439_s22, %s1439_s22, %s1440_s23  }
  0x11   :  { %1436 = dma.done.wait [#allocation3], 4608  }
  0x12   :  { %1437 = vsyncadd [#allocation3], 4294962688  ;;  %v1441_v0 = vmov 0.0|0.0   ;;  %vm1442_vm0 = vmmov 0   ;;  %v1443_v1 = vmov 0.0   ;;  %v868_v2 = vld [vmem:[#allocation2] sm:$0xff]  }
  0x13   :  { %1298 = vmatprep.subr.bf16.mxu0 %v1441_v0  ;;  %1143 = vmatprep.mubr.msk.f32.mxu0 %vm1442_vm0, %v1443_v1  ;;  %v1014_v3 = vld [vmem:[#allocation2 + $0x20] sm:$0xff]   ;;  %v1011_v4 = vld [vmem:[#allocation2 + $0x8] sm:$0xff]   ;;  %v1012_v6 = vld [vmem:[#allocation2 + $0x10] sm:$0xff]   ;;  %vm47_vm1 = vcmask 523264  }
  0x14   :  { %1310 = vmatprep.subr.bf16.mxu1 %v1441_v0  ;;  %1162 = vmatprep.mubr.msk.f32.mxu1 %vm1442_vm0, %v1443_v1  ;;  %v1015_v5 = vld [vmem:[#allocation2 + $0x28] sm:$0xff]   ;;  %v1016_v7 = vld [vmem:[#allocation2 + $0x30] sm:$0xff]   ;;  %v1013_v8 = vld [vmem:[#allocation2 + $0x18] sm:$0xff]  }
  0x15   :  { %1300 = vmatpush3.bf16.msra.mxu0 %v868_v2  ;;  %1312 = vmatpush3.bf16.msra.mxu1 %v1014_v3  ;;  %v28_v9 = vld [vmem:[%s1584_s0] sm:$0xff]  ;;  %v1017_v10 = vld [vmem:[#allocation2 + $0x38] sm:$0xff]   ;;  %v1019_v12 = vld [vmem:[#allocation2 + $0x48] sm:$0xff]  }
  0x16   :  { %1301 = vmatprep.subr.bf16.mxu0 %v1441_v0  ;;  %1313 = vmatprep.subr.bf16.mxu1 %v1441_v0  ;;  %v1018_v11 = vld [vmem:[#allocation2 + $0x40] sm:$0xff]   ;;  %v1020_v13 = vld [vmem:[#allocation2 + $0x50] sm:$0xff]   ;;  %v1021_v19 = vld [vmem:[#allocation2 + $0x58] sm:$0xff]  }
  0x17   :  { %v46_v14 = vld [vmem:[%s1586_s2] sm:$0xff]  ;;  %v1023_v21 = vld [vmem:[#allocation2 + $0x68] sm:$0xff]   ;;  %v1024_v22 = vld [vmem:[#allocation2 + $0x70] sm:$0xff]  }
  0x18   :  { %v1022_v20 = vld [vmem:[#allocation2 + $0x60] sm:$0xff]   ;;  %v138_v23 = vld [vmem:[%s1586_s2 + $0x8] sm:$0xff]  ;;  %v1028_v30 = vld [vmem:[#allocation2 + $0x90] sm:$0xff]  }
  0x19   :  { %1303 = vmatpush3.bf16.msra.mxu0 %v1011_v4  ;;  %1315 = vmatpush3.bf16.msra.mxu1 %v1015_v5  ;;  %v1026_v28 = vld [vmem:[#allocation2 + $0x80] sm:$0xff]   ;;  %v1027_v29 = vld [vmem:[#allocation2 + $0x88] sm:$0xff]   ;;  %v1025_v31 = vld [vmem:[#allocation2 + $0x78] sm:$0xff]  }
  0x1a   :  { %1304 = vmatprep.subr.bf16.mxu0 %v1441_v0  ;;  %1316 = vmatprep.subr.bf16.mxu1 %v1441_v0  ;;  %v1029_v32 = vld [vmem:[#allocation2 + $0x98] sm:$0xff]   ;;  %v229_v33 = vld [vmem:[%s1586_s2 + $0x10] sm:$0xff]  ;;  %v1030_v38 = vld [vmem:[#allocation2 + $0xa0] sm:$0xff]  }
  0x1b   :  { %v1031_v39 = vld [vmem:[#allocation2 + $0xa8] sm:$0xff]   ;;  %v1032_v40 = vld [vmem:[#allocation2 + $0xb0] sm:$0xff]   ;;  %v1033_v41 = vld [vmem:[#allocation2 + $0xb8] sm:$0xff]  }
  0x1c   :  { %v1034_v42 = vld [vmem:[#allocation2 + $0xc0] sm:$0xff]   ;;  %v1035_v43 = vld [vmem:[#allocation2 + $0xc8] sm:$0xff]   ;;  %v1036_v44 = vld [vmem:[#allocation2 + $0xd0] sm:$0xff]  }
  0x1d   :  { %1306 = vmatpush3.bf16.msra.mxu0 %v1012_v6  ;;  %1318 = vmatpush3.bf16.msra.mxu1 %v1016_v7  ;;  %v320_v45 = vld [vmem:[%s1586_s2 + $0x18] sm:$0xff]  ;;  %v410_v46 = vld [vmem:[%s1586_s2 + $0x20] sm:$0xff]  ;;  %v29_v55 = vld [vmem:[%s1584_s0 + $0x8] sm:$0xff] }
  0x1e   :  { %1307 = vmatprep.subr.bf16.mxu0 %v1441_v0  ;;  %1319 = vmatprep.subr.bf16.mxu1 %v1441_v0  ;;  %v1037_v59 = vld [vmem:[#allocation2 + $0xd8] sm:$0xff]   ;;  %v1038_v60 = vld [vmem:[#allocation2 + $0xe0] sm:$0xff]   ;;  %v1039_v61 = vld [vmem:[#allocation2 + $0xe8] sm:$0xff]  }
  0x1f   :  { %v1040_v62 = vld [vmem:[#allocation2 + $0xf0] sm:$0xff]   ;;  %v502_v63 = vld [vmem:[%s1586_s2 + $0x28] sm:$0xff]  ;;  %v1041_v6 = vld [vmem:[#allocation2 + $0xf8] sm:$0xff]  }
  0x20   :  { %v1042_v7 = vld [vmem:[#allocation2 + $0x100] sm:$0xff]  }
  0x21   :  { %1309 = vmatpush3.bf16.msra.mxu0 %v1013_v8  ;;  %1321 = vmatpush3.bf16.msra.mxu1 %v1017_v10  ;;  %v1043_v8 = vld [vmem:[#allocation2 + $0x108] sm:$0xff]   ;;  %v593_v10 = vld [vmem:[%s1586_s2 + $0x30] sm:$0xff] }
  0x22   :  { %1322 = vmatprep.subr.bf16.mxu0 %v1441_v0  ;;  %1334 = vmatprep.subr.bf16.mxu1 %v1441_v0 }
  0x24   :  { %1144 = vmatmul.mubr.msk.f32.vlgmr.msra.gmra.mrb[0].mxu0 %vm47_vm1, %v28_v9  ;;  %v1044_v9 = vld [vmem:[#allocation2 + $0x110] sm:$0xff]  }
  0x25   :  { %1181 = vmatprep.mubr.msk.f32.mxu0 %vm1442_vm0, %v1443_v1  ;;  %1324 = vmatpush3.bf16.msra.mxu0 %v1018_v11 }
  0x26   :  { %1325 = vmatprep.subr.bf16.mxu0 %v1441_v0 }
  0x29   :  { %1327 = vmatpush3.bf16.msra.mxu0 %v1019_v12 }
  0x2a   :  { %1328 = vmatprep.subr.bf16.mxu0 %v1441_v0 }
  0x2d   :  { %1330 = vmatpush3.bf16.msra.mxu0 %v1020_v13 }
  0x2e   :  { %1331 = vmatprep.subr.bf16.mxu0 %v1441_v0 }
  0x31   :  { %1333 = vmatpush3.bf16.msra.mxu0 %v1021_v19  ;;  %v775_v19 = vld [vmem:[%s1586_s2 + $0x40] sm:$0xff] }
  0x32   :  { %1346 = vmatprep.subr.bf16.mxu0 %v1441_v0 }
  0xf7   :  { %v117_v15 = vpop.f32.mrb[0].mxu0 }
  0xf8   :  { %v118_v16 = vadd.f32 %v117_v15, %v46_v14  ;;  %v1145_v17 = vpop.f32.mrb[1].mxu0  ;;  %v1045_v14 = vld [vmem:[#allocation2 + $0x118] sm:$0xff]  }
  0xf9   :  { %v684_v15 = vld [vmem:[%s1586_s2 + $0x38] sm:$0xff] }
  0xfa   :  { %v121_v18 = vmax.f32 %v118_v16, 0.0 }
  0xfc   :  { %1163 = vmatmul.mubr.msk.f32.vlgmr.msra.gmra.mrb[0].mxu1 %vm47_vm1, %v121_v18 }
  0xfd   :  { %1200 = vmatprep.mubr.msk.f32.mxu1 %vm1442_vm0, %v1443_v1  ;;  %1336 = vmatpush3.bf16.msra.mxu1 %v1022_v20 }
  0xfe   :  { %1337 = vmatprep.subr.bf16.mxu1 %v1441_v0 }
 0x101   :  { %1339 = vmatpush3.bf16.msra.mxu1 %v1023_v21 }
 0x102   :  { %1340 = vmatprep.subr.bf16.mxu1 %v1441_v0 }
 0x105   :  { %1342 = vmatpush3.bf16.msra.mxu1 %v1024_v22 }
 0x106   :  { %1343 = vmatprep.subr.bf16.mxu1 %v1441_v0 }
 0x109   :  { %1345 = vmatpush3.bf16.msra.mxu1 %v1025_v31 }
 0x10a   :  { %1358 = vmatprep.subr.bf16.mxu1 %v1441_v0 }
 0x1cf   :  { %v208_v24 = vpop.f32.mrb[0].mxu1 }
 0x1d0   :  { %v209_v25 = vadd.f32 %v208_v24, %v138_v23  ;;  %v1164_v26 = vpop.f32.mrb[1].mxu1 }
 0x1d2   :  { %v212_v27 = vmax.f32 %v209_v25, 0.0 }
 0x1d4   :  { %1182 = vmatmul.mubr.msk.f32.vlgmr.msra.gmra.mrb[2].mxu0 %vm47_vm1, %v212_v27 }
 0x1d5   :  { %1348 = vmatpush3.bf16.msra.mxu0 %v1026_v28  ;;  %1219 = vmatprep.mubr.msk.f32.mxu0 %vm1442_vm0, %v1443_v1 }
 0x1d6   :  { %1349 = vmatprep.subr.bf16.mxu0 %v1441_v0 }
 0x1d9   :  { %1351 = vmatpush3.bf16.msra.mxu0 %v1027_v29 }
 0x1da   :  { %1352 = vmatprep.subr.bf16.mxu0 %v1441_v0 }
 0x1dd   :  { %1354 = vmatpush3.bf16.msra.mxu0 %v1028_v30 }
 0x1de   :  { %1355 = vmatprep.subr.bf16.mxu0 %v1441_v0 }
 0x1e1   :  { %1357 = vmatpush3.bf16.msra.mxu0 %v1029_v32 }
 0x1e2   :  { %1370 = vmatprep.subr.bf16.mxu0 %v1441_v0 }
 0x2a7   :  { %v299_v34 = vpop.f32.mrb[2].mxu0 }
 0x2a8   :  { %v300_v35 = vadd.f32 %v299_v34, %v229_v33  ;;  %v1183_v36 = vpop.f32.mrb[3].mxu0 }
 0x2aa   :  { %v303_v37 = vmax.f32 %v300_v35, 0.0 }
 0x2ac   :  { %1201 = vmatmul.mubr.msk.f32.vlgmr.msra.gmra.mrb[2].mxu1 %vm47_vm1, %v303_v37  ;;  %1220 = vmatmul.mubr.msk.f32.vlgmr.msra.gmra.mrb[4].mxu0 %vm47_vm1, %v303_v37 }
 0x2ad   :  { %1238 = vmatprep.mubr.msk.f32.mxu1 %vm1442_vm0, %v1443_v1  ;;  %1257 = vmatprep.mubr.msk.f32.mxu0 %vm1442_vm0, %v1443_v1 }
 0x2ae   :  { %1360 = vmatpush3.bf16.msra.mxu1 %v1030_v38  ;;  %1372 = vmatpush3.bf16.msra.mxu0 %v1034_v42 }
 0x2af   :  { %1361 = vmatprep.subr.bf16.mxu1 %v1441_v0  ;;  %1373 = vmatprep.subr.bf16.mxu0 %v1441_v0 }
 0x2b2   :  { %1363 = vmatpush3.bf16.msra.mxu1 %v1031_v39  ;;  %1375 = vmatpush3.bf16.msra.mxu0 %v1035_v43 }
 0x2b3   :  { %1364 = vmatprep.subr.bf16.mxu1 %v1441_v0  ;;  %1376 = vmatprep.subr.bf16.mxu0 %v1441_v0 }
 0x2b6   :  { %1366 = vmatpush3.bf16.msra.mxu1 %v1032_v40  ;;  %1378 = vmatpush3.bf16.msra.mxu0 %v1036_v44 }
 0x2b7   :  { %1367 = vmatprep.subr.bf16.mxu1 %v1441_v0  ;;  %1379 = vmatprep.subr.bf16.mxu0 %v1441_v0 }
 0x2ba   :  { %1369 = vmatpush3.bf16.msra.mxu1 %v1033_v41  ;;  %1381 = vmatpush3.bf16.msra.mxu0 %v1037_v59 }
 0x2bb   :  { %1382 = vmatprep.subr.bf16.mxu1 %v1441_v0  ;;  %1394 = vmatprep.subr.bf16.mxu0 %v1441_v0 }
 0x37f   :  { %v390_v47 = vpop.f32.mrb[2].mxu1  ;;  %v477_v48 = vpop.f32.mrb[4].mxu0 }
 0x380   :  { %v391_v49 = vadd.f32 %v390_v47, %v320_v45  ;;  %v478_v50 = vadd.f32 %v477_v48, %v410_v46  ;;  %v1202_v51 = vpop.f32.mrb[3].mxu1  ;;  %v1221_v52 = vpop.f32.mrb[5].mxu0 }
 0x382   :  { %849 = vst [vmem:[%s1587_s3] sm:$0xff] %v391_v49  ;;  %v481_v53 = vmul.f32 0.5, %v478_v50  ;;  %850 = vst [vmem:[%s1587_s3 + $0x8] sm:$0xff] %v478_v50 }
 0x384   :  { %v482_v54 = vmul.f32 1.442695, %v481_v53 }
 0x386   :  { %1412 = vpow2.f32 %v482_v54 }
 0x390   :  { %v1413_v56 = vpop.eup %1412 }
 0x391   :  { %v484_v57 = vmul.f32 %v1413_v56, %v29_v55 }
 0x393   :  { %v485_v58 = vadd.f32 %v484_v57, %v391_v49 }
 0x395   :  { %1239 = vmatmul.mubr.msk.f32.vlgmr.msra.gmra.mrb[4].mxu1 %vm47_vm1, %v485_v58  ;;  %851 = vst [vmem:[%s1587_s3 + $0x10] sm:$0xff] %v485_v58 }
 0x396   :  { %1276 = vmatprep.mubr.msk.f32.mxu1 %vm1442_vm0, %v1443_v1  ;;  %1384 = vmatpush3.bf16.msra.mxu1 %v1038_v60 }
 0x397   :  { %1385 = vmatprep.subr.bf16.mxu1 %v1441_v0 }
 0x39a   :  { %1387 = vmatpush3.bf16.msra.mxu1 %v1039_v61 }
 0x39b   :  { %1388 = vmatprep.subr.bf16.mxu1 %v1441_v0 }
 0x39e   :  { %1390 = vmatpush3.bf16.msra.mxu1 %v1040_v62 }
 0x39f   :  { %1391 = vmatprep.subr.bf16.mxu1 %v1441_v0 }
 0x3a2   :  { %1393 = vmatpush3.bf16.msra.mxu1 %v1041_v6 }
 0x468   :  { %v572_v2 = vpop.f32.mrb[4].mxu1 }
 0x469   :  { %v573_v3 = vadd.f32 %v572_v2, %v502_v63  ;;  %v1240_v4 = vpop.f32.mrb[5].mxu1 }
 0x46b   :  { %v576_v5 = vmax.f32 %v573_v3, 0.0 }
 0x46d   :  { %1258 = vmatmul.mubr.msk.f32.vlgmr.msra.gmra.mrb[6].mxu0 %vm47_vm1, %v576_v5 }
 0x46e   :  { %1295 = vmatprep.mubr.msk.f32.mxu0 %vm1442_vm0, %v1443_v1  ;;  %1396 = vmatpush3.bf16.msra.mxu0 %v1042_v7 }
 0x46f   :  { %1397 = vmatprep.subr.bf16.mxu0 %v1441_v0 }
 0x472   :  { %1399 = vmatpush3.bf16.msra.mxu0 %v1043_v8 }
 0x473   :  { %1400 = vmatprep.subr.bf16.mxu0 %v1441_v0 }
 0x476   :  { %1402 = vmatpush3.bf16.msra.mxu0 %v1044_v9 }
 0x477   :  { %1403 = vmatprep.subr.bf16.mxu0 %v1441_v0 }
 0x47a   :  { %1405 = vmatpush3.bf16.msra.mxu0 %v1045_v14 }
 0x540   :  { %v663_v11 = vpop.f32.mrb[6].mxu0 }
 0x541   :  { %v664_v1 = vadd.f32 %v663_v11, %v593_v10  ;;  %v1259_v12 = vpop.f32.mrb[7].mxu0 }
 0x543   :  { %v667_v13 = vmax.f32 %v664_v1, 0.0 }
 0x545   :  { %1277 = vmatmul.mubr.msk.f32.vlgmr.msra.gmra.mrb[6].mxu1 %vm47_vm1, %v667_v13 }
 0x618   :  { %v754_v16 = vpop.f32.mrb[6].mxu1 }
 0x619   :  { %v755_v17 = vadd.f32 %v754_v16, %v684_v15  ;;  %v1278_v18 = vpop.f32.mrb[7].mxu1 }
 0x61b   :  { %v758_v0 = vmax.f32 %v755_v17, 0.0 }
 0x61d   :  { %1296 = vmatmul.mubr.msk.f32.vlgmr.msra.gmra.mrb[8].mxu0 %vm47_vm1, %v758_v0 }
 0x6f0   :  { %v845_v20 = vpop.f32.mrb[8].mxu0 }
 0x6f1   :  { %v846_v21 = vadd.f32 %v845_v20, %v775_v19  ;;  %v1297_v22 = vpop.f32.mrb[9].mxu0 }
 0x6f3   :  { %852 = vst [vmem:[%s1587_s3 + $0x18] sm:$0xff] %v846_v21 }
 0x6f4   :  { %857 = vsyncpa [#allocation3], 1 }

</bundles_post_ra>
